<compile_context>
chip_gen: v5e
topology: v5e:2x2
jax: 0.10.0
libtpu: 0.0.40
codegen_flags: <defaults>
</compile_context>

<pallas_src>
import functools

import jax
import jax.numpy as jnp
from jax import lax
from jax.experimental import pallas as pl
from jax.experimental.pallas import tpu as pltpu


def _patch_embed_kernel(patches_ref, w_ref, bias_ref, cls_ref, out_ref):
    # patches_ref: (1, tn, Kp) bf16   w_ref:   (Kp, E) bf16
    # bias_ref:    (1, E) f32         cls_ref: (1, E)  f32
    # out_ref:     (1, tn, E) out dtype
    acc = jnp.dot(patches_ref[0], w_ref[...],
                  preferred_element_type=jnp.float32)
    acc = acc + bias_ref[...]
    # Sequence row 0 (local row 0 of the first row-tile of each batch) is the
    # cls token, not a patch projection (its GEMM input row was a dummy zero
    # row, so it currently holds just the bias).  Replace it with a select.
    row = lax.broadcasted_iota(jnp.int32, acc.shape, 0)
    is_cls = jnp.logical_and(row == 0, pl.program_id(1) == 0)
    acc = jnp.where(is_cls, cls_ref[...], acc)
    out_ref[0] = acc.astype(out_ref.dtype)


def _round_up(x, m):
    return ((x + m - 1) // m) * m


def _cdiv(a, b):
    return (a + b - 1) // b


@functools.partial(jax.jit,
                   static_argnames=("patch_size", "tm", "compute_dtype",
                                    "out_dtype"))
def patch_embedding_cnn(x, weight, bias, cls_token, *, patch_size,
                        tm=512, compute_dtype=jnp.bfloat16, out_dtype=None):
    """x: [B, C, H, W]; weight: [E, C, p, p]; bias: [E]; cls_token: [1, 1, E].

    Returns [B, N+1, E] with the cls token at sequence position 0.
    """
    B, C, H, W = x.shape
    E = weight.shape[0]
    p = patch_size
    Hn, Wn = H // p, W // p
    N = Hn * Wn
    K = C * p * p
    rows = N + 1                       # sequence length including cls token
    if out_dtype is None:
        out_dtype = x.dtype

    # --- glue (XLA, fused under jit): im2col with column order (C, ph, pw),
    # matching the flattened Conv2d weight.  One zero row is prepended per
    # batch so GEMM rows align 1:1 with the [B, N+1, E] output; K is padded to
    # a 128-lane multiple (exact no-op) only when needed, inside the SAME pad.
    Kp = _round_up(K, 128) if K % 128 else K
    patches = x.reshape(B, C, Hn, p, Wn, p).transpose(0, 2, 4, 1, 3, 5)
    patches = patches.reshape(B, N, K).astype(compute_dtype)
    patches = jnp.pad(patches, ((0, 0), (1, 0), (0, Kp - K)))   # [B, N+1, Kp]

    # Conv2d weight [E, C, p, p] -> GEMM weight [Kp, E]; bias/cls stay f32.
    w_mat = weight.reshape(E, K).T.astype(compute_dtype)         # [K, E]
    if Kp != K:
        w_mat = jnp.pad(w_mat, ((0, Kp - K), (0, 0)))            # [Kp, E]
    b_mat = bias.reshape(1, E).astype(jnp.float32)               # [1, E]
    cls_mat = cls_token.reshape(1, E).astype(jnp.float32)        # [1, E]

    # Row tile: as large as requested (multiple of 8), or the full per-batch
    # sequence.  For B == 1 split rows so the grid has >=2 steps (v7x).
    tn = min(tm, _round_up(rows, 8))
    if B == 1:
        half = _round_up(_cdiv(rows, 2), 8)
        if half < rows:
            tn = min(tn, half)
    if tn >= rows:
        tn = rows                       # full-dim block is always legal
    grid = (B, _cdiv(rows, tn))         # partial tail block handled by Pallas

    out = pl.pallas_call(
        _patch_embed_kernel,
        out_shape=jax.ShapeDtypeStruct((B, rows, E), out_dtype),
        grid_spec=pltpu.PrefetchScalarGridSpec(
            num_scalar_prefetch=0,
            grid=grid,
            in_specs=[
                pl.BlockSpec((1, tn, Kp), lambda b, j: (b, j, 0)),  # patches
                pl.BlockSpec((Kp, E), lambda b, j: (0, 0)),         # weight
                pl.BlockSpec((1, E), lambda b, j: (0, 0)),          # bias
                pl.BlockSpec((1, E), lambda b, j: (0, 0)),          # cls
            ],
            out_specs=pl.BlockSpec((1, tn, E), lambda b, j: (b, j, 0)),
        ),
        compiler_params=pltpu.CompilerParams(
            dimension_semantics=("parallel", "parallel"),
            vmem_limit_bytes=32 * 1024 * 1024,
        ),
    )(patches, w_mat, b_mat, cls_mat)
    return out                                                    # [B, N+1, E]


if __name__ == "__main__":
    # Small shapes consistent with the module's forward.
    B, C, H, W = 2, 3, 16, 16
    patch_size = 4
    emb_size = 128

    key = jax.random.PRNGKey(0)
    kx, kw, kb, kc = jax.random.split(key, 4)

    x = jax.random.normal(kx, (B, C, H, W), dtype=jnp.float32)
    weight = jax.random.normal(kw, (emb_size, C, patch_size, patch_size),
                               dtype=jnp.float32) * 0.02
    bias = jax.random.normal(kb, (emb_size,), dtype=jnp.float32) * 0.02
    # cls_token is a learnable parameter (zeros at init in the module); use a
    # non-zero value here so the in-kernel cls-row path is actually exercised.
    cls_token = jax.random.normal(kc, (1, 1, emb_size), dtype=jnp.float32) * 0.02

    out = patch_embedding_cnn(x, weight, bias, cls_token, patch_size=patch_size)
    out = jax.block_until_ready(out)

    # Reference: strided conv on bf16-rounded operands with f32 accumulation
    # (matches bf16 MXU inputs + f32 accumulate + f32 bias add), cls prepended.
    xb = x.astype(jnp.bfloat16).astype(jnp.float32)
    wb = weight.astype(jnp.bfloat16).astype(jnp.float32)
    ref_conv = jax.lax.conv_general_dilated(
        xb, wb, window_strides=(patch_size, patch_size), padding="VALID",
        dimension_numbers=("NCHW", "OIHW", "NCHW")) + bias[None, :, None, None]
    ref = ref_conv.reshape(B, emb_size, -1).transpose(0, 2, 1)      # b (h w) e
    ref = jnp.concatenate(
        [jnp.broadcast_to(cls_token, (B, 1, emb_size)), ref], axis=1)

    N = (H // patch_size) * (W // patch_size)
    assert out.shape == (B, N + 1, emb_size)
    err = float(jnp.max(jnp.abs(out - ref)))
    assert jnp.allclose(out, ref, atol=1e-3, rtol=1e-3), err

    print("KERNEL_OK")
</pallas_src>

<mosaic_0001>
module attributes {stable_mosaic.version = 11 : i64} {
  func.func @_patch_embed_kernel(%arg0: i32, %arg1: i32, %arg2: memref<1x17x128xbf16, #tpu.memory_space<vmem>>, %arg3: memref<128x128xbf16, #tpu.memory_space<vmem>>, %arg4: memref<1x128xf32, #tpu.memory_space<vmem>>, %arg5: memref<1x128xf32, #tpu.memory_space<vmem>>, %arg6: memref<1x17x128xf32, #tpu.memory_space<vmem>>) attributes {dimension_semantics = [#tpu.dimension_semantics<parallel>, #tpu.dimension_semantics<parallel>], iteration_bounds = array<i64: 2, 1>, scalar_prefetch = 0 : i64, scratch_operands = 0 : i64, tpu.core_type = #tpu.core_type<tc>, window_params = [{transform_indices = @transform_0, window_bounds = array<i64: 1, 17, 128>}, {pipeline_mode = #tpu.pipeline_mode<synchronous>, transform_indices = @transform_1, window_bounds = array<i64: 128, 128>}, {pipeline_mode = #tpu.pipeline_mode<synchronous>, transform_indices = @transform_2, window_bounds = array<i64: 1, 128>}, {pipeline_mode = #tpu.pipeline_mode<synchronous>, transform_indices = @transform_3, window_bounds = array<i64: 1, 128>}, {transform_indices = @transform_4, window_bounds = array<i64: 1, 17, 128>}]} {
    %c0 = arith.constant 0 : index
    %c0_0 = arith.constant 0 : index
    %c0_1 = arith.constant 0 : index
    %0 = vector.load %arg2[%c0, %c0_0, %c0_1] : memref<1x17x128xbf16, #tpu.memory_space<vmem>>, vector<1x17x128xbf16>
    %1 = vector.shape_cast %0 : vector<1x17x128xbf16> to vector<17x128xbf16>
    %c0_2 = arith.constant 0 : index
    %c0_3 = arith.constant 0 : index
    %2 = vector.load %arg3[%c0_2, %c0_3] : memref<128x128xbf16, #tpu.memory_space<vmem>>, vector<128x128xbf16>
    %cst = arith.constant dense<0.000000e+00> : vector<17x128xf32>
    %3 = tpu.matmul %1, %2, %cst {dimension_numbers = #tpu.dot_dimension_numbers<[1], [0], [0], [1], [0, 0, 1, 1], [], []>} : vector<17x128xbf16>, vector<128x128xbf16>, vector<17x128xf32> -> vector<17x128xf32>
    %c0_4 = arith.constant 0 : index
    %c0_5 = arith.constant 0 : index
    %4 = vector.load %arg4[%c0_4, %c0_5] : memref<1x128xf32, #tpu.memory_space<vmem>>, vector<1x128xf32>
    %5 = vector.broadcast %4 : vector<1x128xf32> to vector<17x128xf32>
    %6 = arith.addf %3, %5 : vector<17x128xf32>
    %7 = tpu.iota {dimensions = array<i32: 0>} : vector<17x128xi32>
    %c0_i32 = arith.constant 0 : i32
    %8 = vector.broadcast %c0_i32 : i32 to vector<17x128xi32>
    %9 = arith.cmpi eq, %7, %8 : vector<17x128xi32>
    %c0_i32_6 = arith.constant 0 : i32
    %10 = arith.cmpi eq, %arg1, %c0_i32_6 : i32
    %11 = vector.broadcast %10 : i1 to vector<17x128xi1>
    %12 = arith.andi %9, %11 : vector<17x128xi1>
    %c0_7 = arith.constant 0 : index
    %c0_8 = arith.constant 0 : index
    %13 = vector.load %arg5[%c0_7, %c0_8] : memref<1x128xf32, #tpu.memory_space<vmem>>, vector<1x128xf32>
    %14 = vector.shape_cast %13 : vector<1x128xf32> to vector<1x128xf32>
    %15 = vector.broadcast %14 : vector<1x128xf32> to vector<17x128xf32>
    %16 = arith.select %12, %15, %6 : vector<17x128xi1>, vector<17x128xf32>
    %c0_9 = arith.constant 0 : index
    %c0_10 = arith.constant 0 : index
    %c0_11 = arith.constant 0 : index
    %17 = vector.load %arg6[%c0_9, %c0_10, %c0_11] : memref<1x17x128xf32, #tpu.memory_space<vmem>>, vector<1x17x128xf32>
    %18 = vector.shape_cast %17 : vector<1x17x128xf32> to vector<17x128xf32>
    %19 = vector.shape_cast %16 : vector<17x128xf32> to vector<1x17x128xf32>
    tpu.vector_store %arg6[%c0_9, %c0_10, %c0_11], %19 {strides = array<i32>} : memref<1x17x128xf32, #tpu.memory_space<vmem>>, vector<1x17x128xf32>,
    return
  }
  func.func @transform_0(%arg0: i32, %arg1: i32) -> (i32, i32, i32) {
    %c0_i32 = arith.constant 0 : i32
    %c0_i32_0 = arith.constant 0 : i32
    return %arg0, %arg1, %c0_i32 : i32, i32, i32
  }
  func.func @transform_1(%arg0: i32, %arg1: i32) -> (i32, i32) {
    %c0_i32 = arith.constant 0 : i32
    %c0_i32_0 = arith.constant 0 : i32
    %c0_i32_1 = arith.constant 0 : i32
    return %c0_i32, %c0_i32_0 : i32, i32
  }
  func.func @transform_2(%arg0: i32, %arg1: i32) -> (i32, i32) {
    %c0_i32 = arith.constant 0 : i32
    %c0_i32_0 = arith.constant 0 : i32
    %c0_i32_1 = arith.constant 0 : i32
    return %c0_i32, %c0_i32_0 : i32, i32
  }
  func.func @transform_3(%arg0: i32, %arg1: i32) -> (i32, i32) {
    %c0_i32 = arith.constant 0 : i32
    %c0_i32_0 = arith.constant 0 : i32
    %c0_i32_1 = arith.constant 0 : i32
    return %c0_i32, %c0_i32_0 : i32, i32
  }
  func.func @transform_4(%arg0: i32, %arg1: i32) -> (i32, i32, i32) {
    %c0_i32 = arith.constant 0 : i32
    %c0_i32_0 = arith.constant 0 : i32
    return %arg0, %arg1, %c0_i32 : i32, i32, i32
  }
}

</mosaic_0001>

<bundles_post_ra>
// kernel: patch_embedding_cnn.1
= control target key start
LH: loop header
LB: loop body
LE: loop exit
PB: predicated region body
PF: predicated region fallthrough
CT: control target
= control target key end

     0   :  { %s586_s15 = smov 0   ;;  %s588_s16 = smov 0   ;;  %s653_s0 = inlined_call_operand.vmem [shape: bf16[2,17,128], index: 0, kind: input, shape index: {}]   ;;  %s654_s1 = inlined_call_operand.vmem [shape: bf16[128,128], index: 1, kind: input, shape index: {}]   ;;  %s655_s2 = inlined_call_operand.vmem [shape: f32[1,128], index: 2, kind: input, shape index: {}]   ;;  %s656_s3 = inlined_call_operand.vmem [shape: f32[1,128], index: 3, kind: input, shape index: {}]   ;;  %s657_s4 = inlined_call_operand.vmem [shape: f32[2,17,128], index: 4, kind: output, shape index: {}]  }
   0x1   :  { %s590_s17 = smov 0  }
   0x2 LB: > { %s26_s18 = sadd.s32 1, %s555_s16  ;;  %p451_p0 = scmp.ge.s32.totalorder %s559_s17, 1  ;;  %s559_s17 = sphi %s590_s17, %s14_s17   ;;  %s555_s16 = sphi %s588_s16, %s659_s16   ;;  %s551_s15 = sphi %s586_s15, %s658_s15  }
   0x3   : > { %p28_p1 = scmp.ge.s32.totalorder %s26_s18, 2  ;;  %p183_p2 = scmp.lt.s32.totalorder %s559_s17, 3 }
   0x5   : > { %s661_s18 = smov (%p28_p1, %s26_s18), 0  ;;  %p184_p3 = pnand %p451_p0, %p183_p2 }
   0x6   : > { %p218_p4 = scmp.lt.s32.totalorder (!%p184_p3), %s551_s15, 1 }
   0x7   : > { %187 = sbr.rel (%p184_p3) target bundleno = 181 (0xb5), region = 36 }
   0xc   : > { %v500_v0 = vld [vmem:[%s654_s1 + $0x38] sm:$0xff]  ;;  %v499_v1 = vld [vmem:[%s654_s1 + $0x30] sm:$0xff]  ;;  %v498_v2 = vld [vmem:[%s654_s1 + $0x28] sm:$0xff]  ;;  %s663_s15 = smov (!%p218_p4, %s551_s15), 1  ;;  %v336_v12 = vlaneseq }
   0xd   : > { %318 = vmatpush.bf16.msra.mxu0 %v500_v0  ;;  %501 = vmatpush.bf16.msra.mxu1 %v500_v0  ;;  %v497_v3 = vld [vmem:[%s654_s1 + $0x20] sm:$0xff]  ;;  %v496_v4 = vld [vmem:[%s654_s1 + $0x18] sm:$0xff]  ;;  %s509_s29 = smul.u32 12, %s663_s15  ;;  %v495_v5 = vld [vmem:[%s654_s1 + $0x10] sm:$0xff] }
   0xe   : > { %v494_v6 = vld [vmem:[%s654_s1 + $0x8] sm:$0xff]  ;;  %v493_v9 = vld [vmem:[%s654_s1] sm:$0xff]  ;;  %v337_v13 = vshrl.u32 %v336_v12, 7  ;;  %s510_s19 = smul.u32 24, %s663_s15 }
   0xf   : > { %s225_s8 = scalar_lea.vmem %s653_s0, %s509_s29  ;;  %v535_v14 = vld [vmem:[%s655_s2] ss:$0 sm:$0xff] }
  0x10   : > { %v239_v7 = vld [vmem:[%s225_s8 + $0x8] sm:$0x1]  ;;  %v492_v10 = vld [vmem:[%s225_s8] sm:$0xff]  ;;  %vm340_vm0 = vcmp.eq.s32.totalorder %v337_v13, 0  ;;  %s235_s24 = scalar_lea.vmem %s657_s4, %s510_s19 }
  0x11   : > { %319 = vmatpush.bf16.msra.mxu0 %v499_v1  ;;  %502 = vmatpush.bf16.msra.mxu1 %v499_v1  ;;  %v265_v8 = vunpack.c.l.b16 %v239_v7  ;;  %v536_v15 = vld [vmem:[%s656_s3] ss:$0 sm:$0xff] }
  0x13   : > { %v267_v11 = vpack.c.b16 %v265_v8, %v265_v8 }
  0x15   : > { %320 = vmatpush.bf16.msra.mxu0 %v498_v2  ;;  %503 = vmatpush.bf16.msra.mxu1 %v498_v2 }
  0x19   : > { %321 = vmatpush.bf16.msra.mxu0 %v497_v3  ;;  %504 = vmatpush.bf16.msra.mxu1 %v497_v3 }
  0x1d   : > { %322 = vmatpush.bf16.msra.mxu0 %v496_v4  ;;  %505 = vmatpush.bf16.msra.mxu1 %v496_v4 }
  0x21   : > { %323 = vmatpush.bf16.msra.mxu0 %v495_v5  ;;  %506 = vmatpush.bf16.msra.mxu1 %v495_v5 }
  0x25   : > { %324 = vmatpush.bf16.msra.mxu0 %v494_v6  ;;  %507 = vmatpush.bf16.msra.mxu1 %v494_v6 }
  0x29   : > { %325 = vmatpush.bf16.msra.mxu0 %v493_v9  ;;  %508 = vmatpush.bf16.msra.mxu1 %v493_v9 }
  0x2c   : > { %326 = vmatmul.bf16.vlgmr.msra.gmra.mxu0 %v492_v10  ;;  %331 = vmatmul.bf16.vlgmr.msra.gmra.mxu1 %v267_v11 }
  0xa9   : > { %v327_v16 = vpop.f32.mrf.mxu0  ;;  %v332_v17 = vpop.f32.mrf.mxu1 }
  0xaa   : > { %v328_v18 = vadd.f32 %v535_v14, %v327_v16  ;;  %v333_v19 = vadd.f32 %v535_v14, %v332_v17 }
  0xac   : > { %v354_v20 = vsel %vm340_vm0, %v536_v15, %v328_v18  ;;  %359 = vst [vmem:[%s235_s24 + $0x10] sm:$0x1] %v333_v19 }
  0xad   : > { %357 = vst [vmem:[%s235_s24] sm:$0xff] %v354_v20 }
  0xb1   : > { %v329_v21 = vpop.f32.mrf.mxu0  ;;  %v334_v22 = vpop.f32.mrf.mxu1 }
  0xb2   : > { %v330_v23 = vadd.f32 %v535_v14, %v329_v21 }
  0xb4   : > { %358 = vst [vmem:[%s235_s24 + $0x8] sm:$0xff] %v330_v23 }
  0xb5 PF: > { %s14_s17 = sadd.s32 1, %s559_s17   ;;  %s658_s15 = smov %s555_s16 }
  0xb6   : > { %p11_p5 = scmp.ge.s32.totalorder %s14_s17, 4   ;;  %s659_s16 = smov %s661_s18 }
  0xb8   :  { %13 = sbr.rel (!%p11_p5) target bundleno = 2 (0x2), region = 66 }

</bundles_post_ra>
